<compile_context>
chip_gen: v7x
topology: tpu7x:2x2x1
jax: 0.10.0
libtpu: 0.0.40
codegen_flags: <defaults>
</compile_context>

<pallas_src>
import jax
import jax.numpy as jnp
from jax.experimental import pallas as pl
from jax.experimental.pallas import tpu as pltpu

# ----------------------------- problem sizes --------------------------------
P = 3       # number of mid models (passive parties)
B = 8       # batch (multiple of 8 -> full f32 sublane tiles)
D = 16      # per-party raw feature dim (input to each mid model)
H = 32      # mid-model embedding dim
DL = 32     # feature dim of the last (active-party) input, fed straight to global
C = 8       # global model output dim
SLAB = 128  # lane width of input/output slabs (layout choice, not an MXU-fill need)

# Layout invariants of this packing (pad if shapes change).
assert P * H + DL == SLAB
assert P * D <= P * H
assert C + P <= SLAB

PARAM_ROWS = 3 * SLAB + 8   # 392: three 128x128 weight blocks + one sublane tile
                            # holding the bias/constant rows


# ------------------------------- kernel --------------------------------------
def _active_global_mid_kernel(x_ref, p_ref, out_ref):
    # x_ref  : (B, 128)   lanes [0:P*D]=mid inputs, [P*D:96]=0, [96:128]=x_last
    # p_ref  : (392, 128) pre-packed parameter slab (see pack_params)
    # out_ref: (B, 128)   lanes [0:C]=global out, [C:C+P]=mid losses, rest 0
    x = x_ref[...]                                       # (B, 128)

    wm    = p_ref[0:SLAB, :]                             # (128, 128)
    wg    = p_ref[SLAB:2 * SLAB, :]                      # (128, 128)
    sel   = p_ref[2 * SLAB:3 * SLAB, :]                  # (128, 128)
    b_mid = p_ref[3 * SLAB + 0:3 * SLAB + 1, :]          # (1, 128)
    bg    = p_ref[3 * SLAB + 1:3 * SLAB + 2, :]          # (1, 128)
    floor = p_ref[3 * SLAB + 2:3 * SLAB + 3, :]          # (1, 128)

    # All P mid models (block-diag weights) + x_last pass-through: one MXU pass.
    h = jnp.dot(x, wm, preferred_element_type=jnp.float32) + b_mid      # (B, 128)
    # ReLU on mid lanes, identity on x_last lanes: single VPU max vs floor row.
    cat = jnp.maximum(h, floor)                                         # (B, 128)

    # Global model: concat(z_0..z_{P-1}, x_last) @ Wg + bg on lanes [0:C].
    out = jnp.dot(cat, wg, preferred_element_type=jnp.float32) + bg     # (B, 128)

    # Mid losses: scaled per-party lane sums land directly on lanes [C:C+P];
    # batch reduction is an XLU sublane sum (no third dependent MXU op).
    zsq = cat * cat
    per_party = jnp.dot(zsq, sel, preferred_element_type=jnp.float32)   # (B, 128)
    loss_row = jnp.sum(per_party, axis=0, keepdims=True)                # (1, 128)

    # Single unmasked lane-dense store.
    out_ref[...] = out + loss_row


# --------------------------- init-time packing --------------------------------
def pack_params(w_mid, b_mid, wg, bg):
    """Build the (392, 128) parameter slab ONCE (off the hot path).
       w_mid: (P,D,H), b_mid: (P,H), wg: (P*H + DL, C), bg: (C,)."""
    f32 = jnp.float32

    # Block-diagonal mid weights; identity block copies x_last input lanes
    # [96:128] straight into cat lanes [96:128].
    wm = jnp.zeros((SLAB, SLAB), f32)
    for i in range(P):
        wm = wm.at[i * D:(i + 1) * D, i * H:(i + 1) * H].set(w_mid[i].astype(f32))
    wm = wm.at[P * H:SLAB, P * H:SLAB].set(jnp.eye(DL, dtype=f32))

    # Global weights zero-padded to 128 output lanes.
    wg_pad = jnp.zeros((SLAB, SLAB), f32).at[:, :C].set(wg.astype(f32))

    # Loss selector with 1/(B*H) folded in; party i -> output lane C+i.
    sel = jnp.zeros((SLAB, SLAB), f32)
    scale = 1.0 / float(B * H)
    for i in range(P):
        sel = sel.at[i * H:(i + 1) * H, C + i].set(scale)

    b_mid_row = jnp.zeros((SLAB,), f32).at[:P * H].set(b_mid.reshape(-1).astype(f32))
    bg_row = jnp.zeros((SLAB,), f32).at[:C].set(bg.astype(f32))
    fmin = float(jnp.finfo(f32).min)
    floor_row = jnp.zeros((SLAB,), f32).at[P * H:].set(fmin)

    params = jnp.zeros((PARAM_ROWS, SLAB), f32)
    params = params.at[0:SLAB].set(wm)
    params = params.at[SLAB:2 * SLAB].set(wg_pad)
    params = params.at[2 * SLAB:3 * SLAB].set(sel)
    params = params.at[3 * SLAB + 0].set(b_mid_row)
    params = params.at[3 * SLAB + 1].set(bg_row)
    params = params.at[3 * SLAB + 2].set(floor_row)
    return params


# ------------------------------- forward --------------------------------------
@jax.jit
def active_global_mid_forward(xs, x_last, params):
    """xs: (P,B,D), x_last: (B,DL), params: pre-packed (392,128) slab.
       Returns (out (B,C), mid_losses (P,))."""
    # Lane-dense (B,128) input slab; this packing fuses under jit.
    x_packed = jnp.zeros((B, SLAB), jnp.float32)
    x_packed = x_packed.at[:, :P * D].set(
        jnp.transpose(xs, (1, 0, 2)).reshape(B, P * D))
    x_packed = x_packed.at[:, P * H:P * H + DL].set(x_last)

    vmem = pl.BlockSpec(memory_space=pltpu.MemorySpace.VMEM)
    slab = pl.pallas_call(
        _active_global_mid_kernel,
        out_shape=jax.ShapeDtypeStruct((B, SLAB), jnp.float32),
        in_specs=[vmem, vmem],
        out_specs=vmem,
    )(x_packed, params)

    return slab[:, :C], slab[0, C:C + P]


# ------------------------------ reference ------------------------------------
def reference_forward(xs, x_last, w_mid, b_mid, wg, bg):
    z_list = []
    losses = []
    for i in range(P):
        z = jnp.maximum(xs[i] @ w_mid[i] + b_mid[i], 0.0)
        z_list.append(z)
        losses.append(jnp.mean(z * z))
    z_list.append(x_last)
    z_cat = jnp.concatenate(z_list, axis=-1)
    return z_cat @ wg + bg, jnp.stack(losses)


# -------------------------------- main ----------------------------------------
if __name__ == "__main__":
    key = jax.random.PRNGKey(0)
    k1, k2, k3, k4, k5, k6 = jax.random.split(key, 6)

    xs = jax.random.normal(k1, (P, B, D), jnp.float32)
    x_last = jax.random.normal(k2, (B, DL), jnp.float32)
    w_mid = jax.random.normal(k3, (P, D, H), jnp.float32) * 0.1
    b_mid = jax.random.normal(k4, (P, H), jnp.float32) * 0.1
    wg = jax.random.normal(k5, (P * H + DL, C), jnp.float32) * 0.1
    bg = jax.random.normal(k6, (C,), jnp.float32) * 0.1

    # Init-time parameter packing (NOT on the per-call path).
    params = jax.block_until_ready(pack_params(w_mid, b_mid, wg, bg))

    out, mid_losses = active_global_mid_forward(xs, x_last, params)
    out = jax.block_until_ready(out)
    mid_losses = jax.block_until_ready(mid_losses)

    ref_out, ref_losses = reference_forward(xs, x_last, w_mid, b_mid, wg, bg)

    assert jnp.allclose(out, ref_out, atol=1e-4, rtol=1e-4), "global output mismatch"
    assert jnp.allclose(mid_losses, ref_losses, atol=1e-5, rtol=1e-5), "mid loss mismatch"

    print("KERNEL_OK")
</pallas_src>

<mosaic_0001>
module attributes {stable_mosaic.version = 11 : i64} {
  func.func @_active_global_mid_kernel(%arg0: memref<8x128xf32, #tpu.memory_space<vmem>>, %arg1: memref<392x128xf32, #tpu.memory_space<vmem>>, %arg2: memref<8x128xf32, #tpu.memory_space<vmem>>) attributes {dimension_semantics = [], scalar_prefetch = 0 : i64, scratch_operands = 0 : i64, tpu.core_type = #tpu.core_type<tc>} {
    %c0 = arith.constant 0 : index
    %c0_0 = arith.constant 0 : index
    %0 = vector.load %arg0[%c0, %c0_0] : memref<8x128xf32, #tpu.memory_space<vmem>>, vector<8x128xf32>
    %c0_1 = arith.constant 0 : index
    %c0_2 = arith.constant 0 : index
    %1 = vector.load %arg1[%c0_1, %c0_2] : memref<392x128xf32, #tpu.memory_space<vmem>>, vector<128x128xf32>
    %c128 = arith.constant 128 : index
    %c0_3 = arith.constant 0 : index
    %2 = vector.load %arg1[%c128, %c0_3] : memref<392x128xf32, #tpu.memory_space<vmem>>, vector<128x128xf32>
    %c256 = arith.constant 256 : index
    %c0_4 = arith.constant 0 : index
    %3 = vector.load %arg1[%c256, %c0_4] : memref<392x128xf32, #tpu.memory_space<vmem>>, vector<128x128xf32>
    %c384 = arith.constant 384 : index
    %c0_5 = arith.constant 0 : index
    %4 = vector.load %arg1[%c384, %c0_5] : memref<392x128xf32, #tpu.memory_space<vmem>>, vector<1x128xf32>
    %c385 = arith.constant 385 : index
    %c0_6 = arith.constant 0 : index
    %5 = vector.load %arg1[%c385, %c0_6] : memref<392x128xf32, #tpu.memory_space<vmem>>, vector<1x128xf32>
    %c386 = arith.constant 386 : index
    %c0_7 = arith.constant 0 : index
    %6 = vector.load %arg1[%c386, %c0_7] : memref<392x128xf32, #tpu.memory_space<vmem>>, vector<1x128xf32>
    %cst = arith.constant dense<0.000000e+00> : vector<8x128xf32>
    %7 = tpu.matmul %0, %1, %cst {dimension_numbers = #tpu.dot_dimension_numbers<[1], [0], [0], [1], [0, 0, 1, 1], [], []>} : vector<8x128xf32>, vector<128x128xf32>, vector<8x128xf32> -> vector<8x128xf32>
    %8 = vector.broadcast %4 : vector<1x128xf32> to vector<8x128xf32>
    %9 = arith.addf %7, %8 : vector<8x128xf32>
    %10 = vector.broadcast %6 : vector<1x128xf32> to vector<8x128xf32>
    %11 = arith.maximumf %9, %10 : vector<8x128xf32>
    %cst_8 = arith.constant dense<0.000000e+00> : vector<8x128xf32>
    %12 = tpu.matmul %11, %2, %cst_8 {dimension_numbers = #tpu.dot_dimension_numbers<[1], [0], [0], [1], [0, 0, 1, 1], [], []>} : vector<8x128xf32>, vector<128x128xf32>, vector<8x128xf32> -> vector<8x128xf32>
    %13 = vector.broadcast %5 : vector<1x128xf32> to vector<8x128xf32>
    %14 = arith.addf %12, %13 : vector<8x128xf32>
    %15 = arith.mulf %11, %11 : vector<8x128xf32>
    %cst_9 = arith.constant dense<0.000000e+00> : vector<8x128xf32>
    %16 = tpu.matmul %15, %3, %cst_9 {dimension_numbers = #tpu.dot_dimension_numbers<[1], [0], [0], [1], [0, 0, 1, 1], [], []>} : vector<8x128xf32>, vector<128x128xf32>, vector<8x128xf32> -> vector<8x128xf32>
    %cst_10 = arith.constant dense<0.000000e+00> : vector<128xf32>
    %17 = vector.multi_reduction <add>, %16, %cst_10 [0] : vector<8x128xf32> to vector<128xf32>
    %18 = vector.shape_cast %17 : vector<128xf32> to vector<1x128xf32>
    %19 = vector.broadcast %18 : vector<1x128xf32> to vector<8x128xf32>
    %20 = arith.addf %14, %19 : vector<8x128xf32>
    %c0_11 = arith.constant 0 : index
    %c0_12 = arith.constant 0 : index
    %21 = vector.load %arg2[%c0_11, %c0_12] : memref<8x128xf32, #tpu.memory_space<vmem>>, vector<8x128xf32>
    tpu.vector_store %arg2[%c0_11, %c0_12], %20 {strides = array<i32>} : memref<8x128xf32, #tpu.memory_space<vmem>>, vector<8x128xf32>,
    return
  }
}

</mosaic_0001>

<bundles_post_ra>
// kernel: active_global_mid_forward.1
= control target key start
LH: loop header
LB: loop body
LE: loop exit
PB: predicated region body
PF: predicated region fallthrough
CT: control target
= control target key end

     0   :  { %7 = vsyncpa [#allocation3], 0  ;;  %s575_s9 = smov [#allocation2]   ;;  %s644_s0 = inlined_call_operand.vmem [shape: f32[8,128], index: 0, kind: input, shape index: {}]   ;;  %s645_s1 = inlined_call_operand.hbm [shape: f32[392,128], index: 1, kind: input, shape index: {}]   ;;  %s646_s2 = inlined_call_operand.vmem [shape: f32[8,128], index: 2, kind: output, shape index: {}]  }
   0x1   :  { %s15_s10 = sshll.u32 %s575_s9, 4  ;;  %s551_s13 = scalar_lea.hbm %s645_s1, 6272  ;;  %s16_s10 = int_to_ptr.vmem [resolvable:$true] %s15_s10 }
   0x2   :  { %p552_p0 = scmp.ne.s32.totalorder %s645_s1, %s551_s13  ;;  %p555_p1 = scmp.lt.u32.totalorder %s551_s13, %s645_s1 }
   0x4   :  { %p557_p2 = pnand %p555_p1, %p552_p0 }
   0x6   :  { %560 = shalt.err (!%p557_p2)
}
   0x7   :  { %s561_s18 = scalar_lea.vmem %s16_s10, 6272  ;;  %p566_p4 = scmp.lt.s32.totalorder %s16_s10, %s16_s10 }
   0x8   :  { %p562_p3 = scmp.ne.s32.totalorder %s16_s10, %s561_s18  ;;  %p567_p5 = scmp.lt.s32.totalorder %s561_s18, %s561_s18 }
   0xa   :  { %p568_p6 = por %p567_p5, %p566_p4 }
   0xc   :  { %p569_p7 = pnand %p568_p6, %p562_p3 }
   0xe   :  { %572 = shalt.err (!%p569_p7)
}
   0xf   :  { %s576_s19 = smov 128   ;;  %s577_s20 = smov 8  }
  0x10   :  { %21 = dma.hbm_to_vmem [thread:$0]  %s645_s1, 6272, %s16_s10, [#allocation3], %s576_s19, %s576_s19, %s577_s20  }
  0x11   :  { %573 = dma.done.wait [#allocation3], 6272  }
  0x12   :  { %574 = vsyncadd [#allocation3], 4294961024  ;;  %v578_v0 = vmov 0.0|0.0   ;;  %vm579_vm0 = vmmov 0   ;;  %v580_v1 = vmov 0.0   ;;  %v26_v2 = vld [vmem:[#allocation2] sm:$0xff] }
  0x13   :  { %473 = vmatprep.subr.bf16.mxu0 %v578_v0  ;;  %400 = vmatprep.mubr.msk.f32.mxu0 %vm579_vm0, %v580_v1  ;;  %v27_v3 = vld [vmem:[#allocation2 + $0x8] sm:$0xff]  ;;  %v28_v4 = vld [vmem:[#allocation2 + $0x10] sm:$0xff]  ;;  %v29_v6 = vld [vmem:[#allocation2 + $0x18] sm:$0xff] }
  0x14   :  { %497 = vmatprep.subr.bf16.mxu1 %v578_v0  ;;  %435 = vmatprep.mubr.msk.f32.mxu1 %vm579_vm0, %v580_v1  ;;  %v474_v5 = vpack.c.bf16 %v27_v3, %v26_v2  ;;  %v477_v7 = vpack.c.bf16 %v29_v6, %v28_v4  ;;  %v30_v8 = vld [vmem:[#allocation2 + $0x20] sm:$0xff]  ;;  %v31_v9 = vld [vmem:[#allocation2 + $0x28] sm:$0xff]  ;;  %v44_v14 = vld [vmem:[#allocation2 + $0x90] sm:$0xff] }
  0x15   :  { %v42_v10 = vld [vmem:[#allocation2 + $0x80] sm:$0xff]  ;;  %v43_v11 = vld [vmem:[#allocation2 + $0x88] sm:$0xff]  ;;  %v480_v12 = vpack.c.bf16 %v31_v9, %v30_v8  ;;  %v45_v15 = vld [vmem:[#allocation2 + $0x98] sm:$0xff] }
  0x16   :  { %475 = vmatpush3.bf16.msra.mxu0 %v474_v5  ;;  %v498_v13 = vpack.c.bf16 %v43_v11, %v42_v10  ;;  %v32_v16 = vld [vmem:[#allocation2 + $0x30] sm:$0xff]  ;;  %v33_v17 = vld [vmem:[#allocation2 + $0x38] sm:$0xff]  ;;  %v501_v18 = vpack.c.bf16 %v45_v15, %v44_v14  ;;  %v46_v19 = vld [vmem:[#allocation2 + $0xa0] sm:$0xff] }
  0x17   :  { %476 = vmatprep.subr.bf16.mxu0 %v578_v0  ;;  %v47_v20 = vld [vmem:[#allocation2 + $0xa8] sm:$0xff]  ;;  %v483_v21 = vpack.c.bf16 %v33_v17, %v32_v16  ;;  %v34_v22 = vld [vmem:[#allocation2 + $0x40] sm:$0xff]  ;;  %v48_v25 = vld [vmem:[#allocation2 + $0xb0] sm:$0xff] }
  0x18   :  { %499 = vmatpush3.bf16.msra.mxu1 %v498_v13  ;;  %v35_v23 = vld [vmem:[#allocation2 + $0x48] sm:$0xff]  ;;  %v504_v24 = vpack.c.bf16 %v47_v20, %v46_v19  ;;  %v49_v26 = vld [vmem:[#allocation2 + $0xb8] sm:$0xff]  ;;  %v36_v28 = vld [vmem:[#allocation2 + $0x50] sm:$0xff] }
  0x19   :  { %500 = vmatprep.subr.bf16.mxu1 %v578_v0  ;;  %v486_v27 = vpack.c.bf16 %v35_v23, %v34_v22  ;;  %v37_v29 = vld [vmem:[#allocation2 + $0x58] sm:$0xff]  ;;  %v507_v30 = vpack.c.bf16 %v49_v26, %v48_v25  ;;  %v50_v31 = vld [vmem:[#allocation2 + $0xc0] sm:$0xff]  ;;  %v51_v32 = vld [vmem:[#allocation2 + $0xc8] sm:$0xff] }
  0x1a   :  { %478 = vmatpush3.bf16.msra.mxu0 %v477_v7  ;;  %v489_v33 = vpack.c.bf16 %v37_v29, %v36_v28  ;;  %v38_v34 = vld [vmem:[#allocation2 + $0x60] sm:$0xff]  ;;  %v39_v35 = vld [vmem:[#allocation2 + $0x68] sm:$0xff]  ;;  %v510_v36 = vpack.c.bf16 %v51_v32, %v50_v31  ;;  %v52_v37 = vld [vmem:[#allocation2 + $0xd0] sm:$0xff] }
  0x1b   :  { %479 = vmatprep.subr.bf16.mxu0 %v578_v0  ;;  %v53_v38 = vld [vmem:[#allocation2 + $0xd8] sm:$0xff]  ;;  %v492_v39 = vpack.c.bf16 %v39_v35, %v38_v34  ;;  %v40_v40 = vld [vmem:[#allocation2 + $0x70] sm:$0xff]  ;;  %v54_v43 = vld [vmem:[#allocation2 + $0xe0] sm:$0xff] }
  0x1c   :  { %502 = vmatpush3.bf16.msra.mxu1 %v501_v18  ;;  %v41_v41 = vld [vmem:[#allocation2 + $0x78] sm:$0xff]  ;;  %v513_v42 = vpack.c.bf16 %v53_v38, %v52_v37  ;;  %v55_v44 = vld [vmem:[#allocation2 + $0xe8] sm:$0xff]  ;;  %v58_v46 = vld [vmem:[#allocation2 + $0x100] sm:$0xff] }
  0x1d   :  { %503 = vmatprep.subr.bf16.mxu1 %v578_v0  ;;  %v495_v45 = vpack.c.bf16 %v41_v41, %v40_v40  ;;  %v59_v47 = vld [vmem:[#allocation2 + $0x108] sm:$0xff]  ;;  %v516_v48 = vpack.c.bf16 %v55_v44, %v54_v43  ;;  %v25_v49 = vld [vmem:[%s644_s0] sm:$0xff]  ;;  %v60_v51 = vld [vmem:[#allocation2 + $0x110] sm:$0xff] }
  0x1e   :  { %481 = vmatpush3.bf16.msra.mxu0 %v480_v12  ;;  %v522_v50 = vpack.c.bf16 %v59_v47, %v58_v46  ;;  %v61_v52 = vld [vmem:[#allocation2 + $0x118] sm:$0xff]  ;;  %v62_v54 = vld [vmem:[#allocation2 + $0x120] sm:$0xff]  ;;  %v63_v55 = vld [vmem:[#allocation2 + $0x128] sm:$0xff] }
  0x1f   :  { %482 = vmatprep.subr.bf16.mxu0 %v578_v0  ;;  %v525_v53 = vpack.c.bf16 %v61_v52, %v60_v51  ;;  %v528_v56 = vpack.c.bf16 %v63_v55, %v62_v54  ;;  %v64_v57 = vld [vmem:[#allocation2 + $0x130] sm:$0xff]  ;;  %v65_v58 = vld [vmem:[#allocation2 + $0x138] sm:$0xff]  ;;  %v66_v60 = vld [vmem:[#allocation2 + $0x140] sm:$0xff] }
  0x20   :  { %505 = vmatpush3.bf16.msra.mxu1 %v504_v24  ;;  %v531_v59 = vpack.c.bf16 %v65_v58, %v64_v57  ;;  %v67_v61 = vld [vmem:[#allocation2 + $0x148] sm:$0xff]  ;;  %v68_v63 = vld [vmem:[#allocation2 + $0x150] sm:$0xff]  ;;  %v70_v3 = vld [vmem:[#allocation2 + $0x160] sm:$0xff] }
  0x21   :  { %506 = vmatprep.subr.bf16.mxu1 %v578_v0  ;;  %v534_v62 = vpack.c.bf16 %v67_v61, %v66_v60  ;;  %v71_v4 = vld [vmem:[#allocation2 + $0x168] sm:$0xff]  ;;  %v56_v6 = vld [vmem:[#allocation2 + $0xf0] sm:$0xff]  ;;  %v57_v7 = vld [vmem:[#allocation2 + $0xf8] sm:$0xff] }
  0x22   :  { %484 = vmatpush3.bf16.msra.mxu0 %v483_v21  ;;  %v540_v5 = vpack.c.bf16 %v71_v4, %v70_v3  ;;  %v519_v8 = vpack.c.bf16 %v57_v7, %v56_v6  ;;  %v72_v9 = vld [vmem:[#allocation2 + $0x170] sm:$0xff]  ;;  %v73_v10 = vld [vmem:[#allocation2 + $0x178] sm:$0xff]  ;;  %v314_v12 = vld [vmem:[#allocation2 + $0x180] ss:$0 sm:$0xff] }
  0x23   :  { %485 = vmatprep.subr.bf16.mxu0 %v578_v0  ;;  %v543_v11 = vpack.c.bf16 %v73_v10, %v72_v9  ;;  %v315_v13 = vld [vmem:[#allocation2 + $0x182] ss:$0 sm:$0xff]  ;;  %v316_v26 = vld [vmem:[#allocation2 + $0x181] ss:$0 sm:$0xff] }
  0x24   :  { %508 = vmatpush3.bf16.msra.mxu1 %v507_v30 }
  0x25   :  { %509 = vmatprep.subr.bf16.mxu1 %v578_v0 }
  0x26   :  { %487 = vmatpush3.bf16.msra.mxu0 %v486_v27 }
  0x27   :  { %488 = vmatprep.subr.bf16.mxu0 %v578_v0 }
  0x28   :  { %511 = vmatpush3.bf16.msra.mxu1 %v510_v36 }
  0x29   :  { %512 = vmatprep.subr.bf16.mxu1 %v578_v0 }
  0x2a   :  { %490 = vmatpush3.bf16.msra.mxu0 %v489_v33 }
  0x2b   :  { %491 = vmatprep.subr.bf16.mxu0 %v578_v0 }
  0x2c   :  { %514 = vmatpush3.bf16.msra.mxu1 %v513_v42 }
  0x2d   :  { %515 = vmatprep.subr.bf16.mxu1 %v578_v0 }
  0x2e   :  { %493 = vmatpush3.bf16.msra.mxu0 %v492_v39 }
  0x2f   :  { %494 = vmatprep.subr.bf16.mxu0 %v578_v0 }
  0x30   :  { %517 = vmatpush3.bf16.msra.mxu1 %v516_v48 }
  0x31   :  { %518 = vmatprep.subr.bf16.mxu1 %v578_v0 }
  0x32   :  { %496 = vmatpush3.bf16.msra.mxu0 %v495_v45 }
  0x33   :  { %521 = vmatprep.subr.bf16.mxu0 %v578_v0 }
  0x34   :  { %520 = vmatpush3.bf16.msra.mxu1 %v519_v8 }
  0x35   :  { %401 = vmatmul.mubr.f32.vlgmr.msra.gmra.mrb[0].mxu0 %v25_v49 }
  0x36   :  { %523 = vmatpush3.bf16.msra.mxu0 %v522_v50  ;;  %470 = vmatprep.mubr.msk.f32.mxu0 %vm579_vm0, %v580_v1  ;;  %v69_v1 = vld [vmem:[#allocation2 + $0x158] sm:$0xff] }
  0x37   :  { %524 = vmatprep.subr.bf16.mxu0 %v578_v0  ;;  %v537_v2 = vpack.c.bf16 %v69_v1, %v68_v63 }
  0x3a   :  { %526 = vmatpush3.bf16.msra.mxu0 %v525_v53 }
  0x3b   :  { %527 = vmatprep.subr.bf16.mxu0 %v578_v0 }
  0x3e   :  { %529 = vmatpush3.bf16.msra.mxu0 %v528_v56 }
  0x3f   :  { %530 = vmatprep.subr.bf16.mxu0 %v578_v0 }
  0x42   :  { %532 = vmatpush3.bf16.msra.mxu0 %v531_v59 }
  0x43   :  { %533 = vmatprep.subr.bf16.mxu0 %v578_v0 }
  0x46   :  { %535 = vmatpush3.bf16.msra.mxu0 %v534_v62 }
  0x47   :  { %536 = vmatprep.subr.bf16.mxu0 %v578_v0 }
  0x4a   :  { %538 = vmatpush3.bf16.msra.mxu0 %v537_v2 }
  0x4b   :  { %539 = vmatprep.subr.bf16.mxu0 %v578_v0 }
  0x4e   :  { %541 = vmatpush3.bf16.msra.mxu0 %v540_v5 }
  0x4f   :  { %542 = vmatprep.subr.bf16.mxu0 %v578_v0 }
  0x52   :  { %544 = vmatpush3.bf16.msra.mxu0 %v543_v11 }
 0x108   :  { %v147_v14 = vpop.f32.mrb[0].mxu0 }
 0x109   :  { %v148_v15 = vadd.f32 %v314_v12, %v147_v14  ;;  %v402_v16 = vpop.f32.mrb[1].mxu0 }
 0x10b   :  { %v155_v17 = vmax.f32 %v148_v15, %v315_v13 }
 0x10d   :  { %v230_v18 = vmul.f32 %v155_v17, %v155_v17  ;;  %436 = vmatmul.mubr.f32.vlgmr.msra.gmra.mrb[0].mxu1 %v155_v17 }
 0x10f   :  { %471 = vmatmul.mubr.f32.vlgmr.msra.gmra.mrb[2].mxu0 %v230_v18 }
 0x1e0   :  { %v226_v19 = vpop.f32.mrb[0].mxu1 }
 0x1e1   :  { %v437_v20 = vpop.f32.mrb[1].mxu1  ;;  %v227_v28 = vadd.f32 %v316_v26, %v226_v19 }
 0x1e2   :  { %v297_v21 = vpop.f32.mrb[2].mxu0 }
 0x1e3   :  { %v301_v22 = vrot.slane %v297_v21, 4  ;;  %v472_v23 = vpop.f32.mrb[3].mxu0 }
 0x1e5   :  { %v302_v0 = vadd.f32 %v301_v22, %v297_v21 }
 0x1e7   :  { %v303_v24 = vrot.slane %v302_v0, 2 }
 0x1e9   :  { %v304_v25 = vadd.f32 %v303_v24, %v302_v0 }
 0x1eb   :  { %v305_v27 = vrot.slane %v304_v25, 1 }
 0x1ed   :  { %v306_v29 = vadd.f32 %v305_v27, %v304_v25 }
 0x1ef   :  { %v307_v30 = vadd.f32 %v306_v29, %v227_v28 }
 0x1f1   :  { %308 = vst [vmem:[%s646_s2] sm:$0xff] %v307_v30 }
 0x1f2   :  { %313 = vsyncpa [#allocation3], 1 }

</bundles_post_ra>
